<compile_context>
chip_gen: v7x
topology: tpu7x:2x2x1
jax: 0.10.0
libtpu: 0.0.40
codegen_flags: <defaults>
</compile_context>

<pallas_src>
import jax
import jax.numpy as jnp
from jax import lax
from jax.experimental import pallas as pl
from jax.experimental.pallas import tpu as pltpu


def _round_up(x: int, m: int) -> int:
    return ((x + m - 1) // m) * m


def _choose_row_tile(B: int, C: int, bytes_per_row_elem: int,
                     target_tile_bytes: int = 4 * 1024 * 1024) -> int:
    """Largest row tile (multiple of 8) whose combined per-step input tile
    (both operands, single buffer) is ~target_tile_bytes."""
    tm = target_tile_bytes // max(1, C * bytes_per_row_elem)
    tm = max(8, (tm // 8) * 8)          # multiple of 8 (sublane), >= 8
    tm = min(tm, _round_up(B, 8))       # never bigger than the (padded) batch
    return int(tm)


def _make_bce_ls_kernel(smoothing: float, B: int, TM: int, C: int, need_mask: bool):
    one_minus_s = 1.0 - float(smoothing)
    half_s = 0.5 * float(smoothing)

    def kernel(x_ref, t_ref, o_ref):
        x = x_ref[...].astype(jnp.float32)
        t = t_ref[...].astype(jnp.float32)
        # label smoothing
        t = t * one_minus_s + half_s
        # numerically stable BCE-with-logits: max(x,0) - x*t + log(1+exp(-|x|))
        loss = jnp.maximum(x, 0.0) - x * t + jnp.log1p(jnp.exp(-jnp.abs(x)))
        if need_mask:
            # mask rows past the real batch (padded tail block)
            i = pl.program_id(0)
            row = lax.broadcasted_iota(jnp.int32, (TM, C), 0) + i * TM
            loss = jnp.where(row < B, loss, 0.0)
        # Fold sublane groups with pure VPU adds (no cross-lane reduce per step);
        # final XLU/lane reduction happens once in the JAX wrapper.
        o_ref[0] = loss.reshape(TM // 8, 8, C).sum(axis=0)

    return kernel


def bce_with_logits_label_smoothing(inputs, targets, smoothing: float = 0.1,
                                    row_tile: int | None = None):
    """inputs, targets: (B, C) arrays (any float/int dtype). Returns f32 scalar mean loss."""
    assert inputs.shape == targets.shape and inputs.ndim == 2
    B, C = inputs.shape

    bytes_per_row_elem = inputs.dtype.itemsize + targets.dtype.itemsize
    TM = int(row_tile) if row_tile is not None else _choose_row_tile(B, C, bytes_per_row_elem)
    nb = pl.cdiv(B, TM)
    need_mask = (B % TM) != 0

    # double-buffered inputs + double-buffered (8, C) partial output + headroom
    vmem_need = 2 * TM * C * bytes_per_row_elem + 2 * 8 * C * 4 + (4 << 20)
    vmem_limit = int(min(100 << 20, max(16 << 20, vmem_need)))

    kernel = _make_bce_ls_kernel(smoothing, B, TM, C, need_mask)

    partials = pl.pallas_call(
        kernel,
        out_shape=jax.ShapeDtypeStruct((nb, 8, C), jnp.float32),
        grid_spec=pltpu.PrefetchScalarGridSpec(
            num_scalar_prefetch=0,
            grid=(nb,),
            in_specs=[
                pl.BlockSpec((TM, C), lambda i: (i, 0)),
                pl.BlockSpec((TM, C), lambda i: (i, 0)),
            ],
            out_specs=pl.BlockSpec((1, 8, C), lambda i: (i, 0, 0)),
        ),
        compiler_params=pltpu.CompilerParams(
            dimension_semantics=("parallel",),   # independent per-block partials
            vmem_limit_bytes=vmem_limit,
        ),
    )(inputs, targets)

    inv_n = jnp.float32(1.0 / float(B * C))
    return jnp.sum(partials, dtype=jnp.float32) * inv_n


def _reference(inputs, targets, smoothing=0.1):
    x = inputs.astype(jnp.float32)
    t = targets.astype(jnp.float32) * (1.0 - smoothing) + 0.5 * smoothing
    loss = jnp.maximum(x, 0.0) - x * t + jnp.log1p(jnp.exp(-jnp.abs(x)))
    return jnp.mean(loss)


if __name__ == "__main__":
    key = jax.random.PRNGKey(0)
    k1, k2 = jax.random.split(key)

    # Small multi-label classification problem; B=10 exercises the ragged
    # (masked) tail-block path since 10 is not a multiple of the 8-row sublane.
    B, C = 10, 128
    logits = jax.random.normal(k1, (B, C), dtype=jnp.float32) * 2.0
    # {0,1} multi-hot targets: bf16 is exact for 0/1 and halves their HBM traffic.
    targets = (jax.random.uniform(k2, (B, C)) > 0.5).astype(jnp.bfloat16)

    loss = bce_with_logits_label_smoothing(logits, targets, smoothing=0.1)
    loss = jax.block_until_ready(loss)

    ref = _reference(logits, targets, smoothing=0.1)
    assert jnp.allclose(loss, ref, atol=1e-5, rtol=1e-5), (loss, ref)

    print("KERNEL_OK")
</pallas_src>

<mosaic_0001>
module attributes {stable_mosaic.version = 11 : i64} {
  func.func @kernel(%arg0: i32, %arg1: memref<16x128xf32, #tpu.memory_space<vmem>>, %arg2: memref<16x128xbf16, #tpu.memory_space<vmem>>, %arg3: memref<1x8x128xf32, #tpu.memory_space<vmem>>) attributes {dimension_semantics = [#tpu.dimension_semantics<parallel>], iteration_bounds = array<i64: 1>, scalar_prefetch = 0 : i64, scratch_operands = 0 : i64, tpu.core_type = #tpu.core_type<tc>, window_params = [{transform_indices = @transform_0, window_bounds = array<i64: 16, 128>}, {transform_indices = @transform_1, window_bounds = array<i64: 16, 128>}, {transform_indices = @transform_2, window_bounds = array<i64: 1, 8, 128>}]} {
    %c0 = arith.constant 0 : index
    %c0_0 = arith.constant 0 : index
    %0 = vector.load %arg1[%c0, %c0_0] : memref<16x128xf32, #tpu.memory_space<vmem>>, vector<16x128xf32>
    %c0_1 = arith.constant 0 : index
    %c0_2 = arith.constant 0 : index
    %1 = vector.load %arg2[%c0_1, %c0_2] : memref<16x128xbf16, #tpu.memory_space<vmem>>, vector<16x128xbf16>
    %2 = arith.extf %1 : vector<16x128xbf16> to vector<16x128xf32>
    %cst = arith.constant 0.899999976 : f32
    %3 = vector.broadcast %cst : f32 to vector<16x128xf32>
    %4 = arith.mulf %2, %3 : vector<16x128xf32>
    %cst_3 = arith.constant 5.000000e-02 : f32
    %5 = vector.broadcast %cst_3 : f32 to vector<16x128xf32>
    %6 = arith.addf %4, %5 : vector<16x128xf32>
    %cst_4 = arith.constant 0.000000e+00 : f32
    %7 = vector.broadcast %cst_4 : f32 to vector<16x128xf32>
    %8 = arith.maximumf %0, %7 : vector<16x128xf32>
    %9 = arith.mulf %0, %6 : vector<16x128xf32>
    %10 = arith.subf %8, %9 : vector<16x128xf32>
    %11 = math.absf %0 : vector<16x128xf32>
    %cst_5 = arith.constant 0.000000e+00 : f32
    %12 = vector.broadcast %cst_5 : f32 to vector<16x128xf32>
    %13 = arith.subf %12, %11 : vector<16x128xf32>
    %14 = math.exp %13 : vector<16x128xf32>
    %15 = math.log1p %14 : vector<16x128xf32>
    %16 = arith.addf %10, %15 : vector<16x128xf32>
    %17 = tpu.iota {dimensions = array<i32: 0>} : vector<16x128xi32>
    %c16_i32 = arith.constant 16 : i32
    %18 = arith.muli %arg0, %c16_i32 : i32
    %19 = vector.broadcast %18 : i32 to vector<16x128xi32>
    %20 = arith.addi %17, %19 : vector<16x128xi32>
    %c10_i32 = arith.constant 10 : i32
    %21 = vector.broadcast %c10_i32 : i32 to vector<16x128xi32>
    %22 = arith.cmpi slt, %20, %21 : vector<16x128xi32>
    %cst_6 = arith.constant 0.000000e+00 : f32
    %23 = vector.broadcast %cst_6 : f32 to vector<16x128xf32>
    %24 = arith.select %22, %16, %23 : vector<16x128xi1>, vector<16x128xf32>
    %25 = vector.shape_cast %24 : vector<16x128xf32> to vector<2x8x128xf32>
    %cst_7 = arith.constant dense<0.000000e+00> : vector<8x128xf32>
    %26 = vector.multi_reduction <add>, %25, %cst_7 [0] : vector<2x8x128xf32> to vector<8x128xf32>
    %c0_8 = arith.constant 0 : index
    %c0_9 = arith.constant 0 : index
    %c0_10 = arith.constant 0 : index
    %27 = vector.load %arg3[%c0_8, %c0_9, %c0_10] : memref<1x8x128xf32, #tpu.memory_space<vmem>>, vector<1x8x128xf32>
    %28 = vector.shape_cast %27 : vector<1x8x128xf32> to vector<8x128xf32>
    %29 = vector.shape_cast %26 : vector<8x128xf32> to vector<1x8x128xf32>
    tpu.vector_store %arg3[%c0_8, %c0_9, %c0_10], %29 {strides = array<i32>} : memref<1x8x128xf32, #tpu.memory_space<vmem>>, vector<1x8x128xf32>,
    return
  }
  func.func @transform_0(%arg0: i32) -> (i32, i32) {
    %c0_i32 = arith.constant 0 : i32
    %c0_i32_0 = arith.constant 0 : i32
    return %arg0, %c0_i32 : i32, i32
  }
  func.func @transform_1(%arg0: i32) -> (i32, i32) {
    %c0_i32 = arith.constant 0 : i32
    %c0_i32_0 = arith.constant 0 : i32
    return %arg0, %c0_i32 : i32, i32
  }
  func.func @transform_2(%arg0: i32) -> (i32, i32, i32) {
    %c0_i32 = arith.constant 0 : i32
    %c0_i32_0 = arith.constant 0 : i32
    %c0_i32_1 = arith.constant 0 : i32
    return %arg0, %c0_i32, %c0_i32_0 : i32, i32, i32
  }
}

</mosaic_0001>

<bundles_post_ra>
// kernel: tpu_custom_call.1
= control target key start
LH: loop header
LB: loop body
LE: loop exit
PB: predicated region body
PF: predicated region fallthrough
CT: control target
= control target key end

     0   :  { %7 = vsyncpa [#allocation3], 0  ;;  %s262_s0 = inlined_call_operand.hbm [shape: f32[10,128], index: 0, kind: input, shape index: {}]   ;;  %s263_s1 = inlined_call_operand.hbm [shape: bf16[10,128], index: 1, kind: input, shape index: {}]   ;;  %s264_s2 = inlined_call_operand.hbm [shape: f32[1,8,128], index: 2, kind: output, shape index: {}]  }
   0x1   :  { %8 = vsyncpa [#allocation6], 0 }
   0x2   :  { %9 = vsyncpa [#allocation4], 0  ;;  %s204_s9 = smov [#allocation2]   ;;  %s132_s13 = scalar_lea.hbm %s262_s0, 256 }
   0x3   :  { %s15_s10 = sshll.u32 %s204_s9, 4  ;;  %p133_p0 = scmp.ne.s32.totalorder %s262_s0, %s132_s13  ;;  %s16_s10 = int_to_ptr.vmem [resolvable:$true] %s15_s10 }
   0x4   :  { %p136_p1 = scmp.lt.u32.totalorder %s132_s13, %s262_s0 }
   0x6   :  { %p138_p2 = pnand %p136_p1, %p133_p0 }
   0x8   :  { %141 = shalt.err (!%p138_p2)
}
   0x9   :  { %s142_s18 = scalar_lea.vmem %s16_s10, 256  ;;  %p147_p4 = scmp.lt.s32.totalorder %s16_s10, %s16_s10 }
   0xa   :  { %p143_p3 = scmp.ne.s32.totalorder %s16_s10, %s142_s18  ;;  %p148_p5 = scmp.lt.s32.totalorder %s142_s18, %s142_s18 }
   0xc   :  { %p149_p6 = por %p148_p5, %p147_p4 }
   0xe   :  { %p150_p7 = pnand %p149_p6, %p143_p3 }
  0x10   :  { %153 = shalt.err (!%p150_p7)
}
  0x11   :  { %s205_s19 = smov 128   ;;  %s206_s20 = smov 8  }
  0x12   :  { %21 = dma.hbm_to_vmem [thread:$0]  %s262_s0, 256, %s16_s10, [#allocation3], %s205_s19, %s205_s19, %s206_s20  }
  0x13   :  { %s207_s23 = smov [#allocation5]   ;;  %s154_s27 = scalar_lea.hbm %s263_s1, 128 }
  0x14   :  { %s27_s24 = sshll.u32 %s207_s23, 4  ;;  %p155_p8 = scmp.ne.s32.totalorder %s263_s1, %s154_s27  ;;  %s28_s24 = int_to_ptr.vmem [resolvable:$true] %s27_s24 }
  0x15   :  { %p158_p9 = scmp.lt.u32.totalorder %s154_s27, %s263_s1 }
  0x17   :  { %p160_p10 = pnand %p158_p9, %p155_p8 }
  0x19   :  { %163 = shalt.err (!%p160_p10)
}
  0x1a   :  { %s164_s4 = scalar_lea.vmem %s28_s24, 128  ;;  %p169_p12 = scmp.lt.s32.totalorder %s28_s24, %s28_s24 }
  0x1b   :  { %p165_p11 = scmp.ne.s32.totalorder %s28_s24, %s164_s4  ;;  %p170_p13 = scmp.lt.s32.totalorder %s164_s4, %s164_s4 }
  0x1d   :  { %p171_p0 = por %p170_p13, %p169_p12 }
  0x1f   :  { %p172_p1 = pnand %p171_p0, %p165_p11 }
  0x21   :  { %175 = shalt.err (!%p172_p1)
}
  0x22   :  { %s208_s0 = smov 64   ;;  %s209_s5 = smov 4  }
  0x23   :  { %33 = dma.hbm_to_vmem [thread:$0]  %s263_s1, 128, %s28_s24, [#allocation6], %s208_s0, %s208_s0, %s209_s5  }
  0x24   :  { %198 = dma.done.wait [#allocation3], 256  }
  0x25   :  { %199 = vsyncadd [#allocation3], 4294967040 }
  0x26   :  { %200 = dma.done.wait [#allocation6], 128  }
  0x27   :  { %201 = vsyncadd [#allocation6], 4294967168  ;;  %v40_v0 = vld [vmem:[#allocation2] sm:$0xff]  ;;  %v41_v1 = vld [vmem:[#allocation2 + $0x8] sm:$0xff]  ;;  %v84_v18 = vlaneseq  ;;  %s210_s1 = smov [#allocation7]  }
  0x28   :  { %v56_v2 = vand.u32 2147483647, %v40_v0  ;;  %v57_v3 = vand.u32 2147483647, %v41_v1  ;;  %v114_v8 = vld [vmem:[#allocation5] sm:$0xff]   ;;  %v50_v24 = vmax.f32 %v40_v0, 0.0 }
  0x29   :  { %v115_v9 = vunpack.c.l.bf16 %v114_v8  ;;  %v116_v10 = vunpack.c.h.bf16 %v114_v8  ;;  %v85_v23 = vshrl.u32 %v84_v18, 7  ;;  %v51_v28 = vmax.f32 %v41_v1, 0.0  ;;  %s103_s8 = sshll.u32 %s210_s1, 4  ;;  %s104_s8 = int_to_ptr.vmem [resolvable:$true] %s103_s8 }
  0x2a   :  { %v58_v4 = vsub.f32 0.0, %v56_v2  ;;  %v59_v5 = vsub.f32 0.0, %v57_v3  ;;  %s176_s9 = scalar_lea.vmem %s104_s8, 128  ;;  %p181_p3 = scmp.lt.s32.totalorder %s104_s8, %s104_s8 }
  0x2b   :  { %v46_v13 = vmul.f32 0.9, %v115_v9  ;;  %v47_v15 = vmul.f32 0.9, %v116_v10  ;;  %v86_v35 = vadd.s32 8, %v85_v23  ;;  %p177_p2 = scmp.ne.s32.totalorder %s104_s8, %s176_s9  ;;  %p182_p4 = scmp.lt.s32.totalorder %s176_s9, %s176_s9 }
  0x2c   :  { %v60_v6 = vmul.f32 1.442695, %v58_v4  ;;  %v62_v7 = vmul.f32 1.442695, %v59_v5 }
  0x2d   :  { %v48_v19 = vadd.f32 0.05, %v46_v13  ;;  %v49_v21 = vadd.f32 0.05, %v47_v15  ;;  %vm92_vm2 = vcmp.lt.s32.totalorder %v86_v35, 10  ;;  %p183_p5 = por %p182_p4, %p181_p3 }
  0x2e   :  { %124 = vpow2.f32 %v60_v6 }
  0x2f   :  { %126 = vpow2.f32 %v62_v7  ;;  %v52_v25 = vmul.f32 %v48_v19, %v40_v0  ;;  %v53_v29 = vmul.f32 %v49_v21, %v41_v1  ;;  %p184_p6 = pnand %p183_p5, %p177_p2 }
  0x31   :  { %v54_v33 = vsub.f32 %v50_v24, %v52_v25  ;;  %v55_v37 = vsub.f32 %v51_v28, %v53_v29 }
  0x38   :  { %v125_v11 = vpop.eup %124 }
  0x39   :  { %v127_v12 = vpop.eup %126  ;;  %v64_v14 = vadd.f32 1.0, %v125_v11  ;;  %v67_v17 = vmul.f32 -0.5, %v125_v11  ;;  %v70_v26 = vand.u32 2147483647, %v125_v11 }
  0x3a   :  { %v73_v16 = vadd.f32 1.0, %v127_v12  ;;  %v76_v20 = vmul.f32 -0.5, %v127_v12  ;;  %v79_v30 = vand.u32 2147483647, %v127_v12 }
  0x3b   :  { %128 = vlog2.f32 %v64_v14  ;;  %v68_v22 = vadd.f32 1.0, %v67_v17  ;;  %vm71_vm0 = vcmp.lt.f32.partialorder %v70_v26, 0.0004427343 }
  0x3c   :  { %130 = vlog2.f32 %v73_v16  ;;  %v77_v27 = vadd.f32 1.0, %v76_v20  ;;  %vm80_vm1 = vcmp.lt.f32.partialorder %v79_v30, 0.0004427343 }
  0x3d   :  { %v69_v31 = vmul.f32 %v125_v11, %v68_v22 }
  0x3e   :  { %v78_v34 = vmul.f32 %v127_v12, %v77_v27 }
  0x45   :  { %v129_v32 = vpop.eup %128 }
  0x46   :  { %v131_v36 = vpop.eup %130  ;;  %v66_v38 = vmul.f32 0.6931472, %v129_v32 }
  0x47   :  { %v75_v39 = vmul.f32 0.6931472, %v131_v36 }
  0x48   :  { %v72_v40 = vsel %vm71_vm0, %v69_v31, %v66_v38 }
  0x49   :  { %v81_v41 = vsel %vm80_vm1, %v78_v34, %v75_v39  ;;  %v82_v42 = vadd.f32 %v72_v40, %v54_v33 }
  0x4a   :  { %v83_v43 = vadd.f32 %v81_v41, %v55_v37 }
  0x4c   :  { %v94_v44 = vsel %vm92_vm2, %v83_v43, 0.0 }
  0x4d   :  { %v95_v45 = vadd.f32 %v94_v44, %v82_v42 }
  0x4f   :  { %96 = vst [vmem:[#allocation7] sm:$0xff] %v95_v45 }
  0x50   :  { %187 = shalt.err (!%p184_p6)
}
  0x51   :  { %s188_s12 = scalar_lea.hbm %s264_s2, 128 }
  0x52   :  { %p189_p7 = scmp.ne.s32.totalorder %s264_s2, %s188_s12  ;;  %p192_p8 = scmp.lt.u32.totalorder %s188_s12, %s264_s2 }
  0x54   :  { %p194_p9 = pnand %p192_p8, %p189_p7 }
  0x56   :  { %197 = shalt.err (!%p194_p9)
}
  0x57   :  { %106 = dma.vmem_to_hbm [thread:$0]  %s104_s8, 128, %s264_s2, [#allocation4]  }
  0x58   :  { %202 = dma.done.wait [#allocation4], 128  }
  0x59   :  { %203 = vsyncadd [#allocation4], 4294967168 }
  0x5a   :  { %110 = vsyncpa [#allocation3], 1 }
  0x5b   :  { %111 = vsyncpa [#allocation6], 1 }
  0x5c   :  { %112 = vsyncpa [#allocation4], 1 }

</bundles_post_ra>
